<compile_context>
chip_gen: v7x
topology: tpu7x:2x2x1
jax: 0.10.0
libtpu: 0.0.40
codegen_flags: <defaults>
</compile_context>

<pallas_src>
import functools

import jax
import jax.numpy as jnp
from jax.experimental import pallas as pl
from jax.experimental.pallas import tpu as pltpu


def _generator_block_kernel(cols_ref, w_ref, bias_ref, g_ref, beta_ref,
                            seg_ref, segt_ref, o_ref, *, inv_n, eps, act):
    # cols_ref : (KKC, L)        phase patches (matmul dtype), L = b_tile*HWq
    # w_ref    : (Mrows, KKC)    phase-stacked flipped weights (matmul dtype)
    # bias_ref : (Mrows, 1)      conv bias per phase-stacked output row (f32)
    # g_ref    : (Mrows, L)      LayerNorm gamma, tiled per sample
    # beta_ref : (Mrows, L)      LayerNorm beta,  tiled per sample
    # seg_ref  : (L, SEG)        0/1 sample-segment matrix (f32)
    # segt_ref : (SEG, L)        its transpose (f32)
    # o_ref    : (Mrows, L)
    #
    # One lane-dense MXU matmul produces every output element (all s*s phases
    # stacked on the rows) of the b_tile samples handled by this grid step.
    y = jnp.dot(w_ref[...], cols_ref[...], preferred_element_type=jnp.float32)
    # Conv bias as a post-dot f32 broadcast-add (keeps the matmul operand
    # contraction dim aligned and the bias at full precision).
    y = y + bias_ref[...]

    # Per-sample LayerNorm moments, fully vectorized (single sweep):
    #   whole-tile sublane reduce -> per-sample segment sums via a tiny 0/1
    #   matmul on the MXU -> broadcast back per segment the same way.
    r1 = jnp.sum(y, axis=0, keepdims=True)            # (1, L)
    r2 = jnp.sum(y * y, axis=0, keepdims=True)        # (1, L)
    s1 = jnp.dot(r1, seg_ref[...], preferred_element_type=jnp.float32)   # (1, SEG)
    s2 = jnp.dot(r2, seg_ref[...], preferred_element_type=jnp.float32)   # (1, SEG)
    mean = jnp.dot(s1, segt_ref[...], preferred_element_type=jnp.float32) * inv_n  # (1, L)
    ex2 = jnp.dot(s2, segt_ref[...], preferred_element_type=jnp.float32) * inv_n   # (1, L)

    var = jnp.maximum(ex2 - mean * mean, 0.0)          # biased var, like PyTorch
    inv_std = jax.lax.rsqrt(var + eps)

    g = g_ref[...].astype(jnp.float32)
    bta = beta_ref[...].astype(jnp.float32)
    yn = (y - mean) * inv_std * g + bta
    if act == "relu":
        yn = jnp.maximum(yn, 0.0)
    elif act == "tanh":
        yn = jnp.tanh(yn)
    elif act == "sigmoid":
        yn = jax.nn.sigmoid(yn)
    # Single lane-dense store of the whole block.
    o_ref[...] = yn.astype(o_ref.dtype)


def _phase_patches(x, kp):
    """im2col patches of the *un-dilated* input for the phase-decomposed
    transposed convolution (only kp^2 = (K/s)^2 taps per input channel; the
    structurally-zero taps of the dilated formulation are never built)."""
    n, c, h_in, w_in = x.shape
    p = kp - 1
    xp = jnp.pad(x, ((0, 0), (0, 0), (p, p), (p, p)))
    hq, wq = h_in + p, w_in + p                  # per-phase output spatial size
    slabs = [xp[:, :, jh:jh + hq, jw:jw + wq]
             for jh in range(kp) for jw in range(kp)]
    cols = jnp.stack(slabs, axis=2)              # (N, C, kp*kp, hq, wq)
    return cols.reshape(n, c * kp * kp, hq * wq), hq, wq


def _vmem_capacity_bytes():
    try:
        info = pltpu.get_tpu_info()
        cap = getattr(info, "vmem_capacity_bytes", None)
        if cap:
            return int(cap)
    except Exception:
        pass
    return 64 * 1024 * 1024      # conservative (v7x per-TensorCore VMEM)


def generator_block(x, w, b, gamma, beta, *, stride, activation_fn="relu",
                    eps=1e-5, matmul_dtype=jnp.bfloat16):
    """x: (N, C_in, H_in, W_in) NCHW; w: (C_in, C_out, K, K) (PyTorch layout);
    gamma/beta: (C_out, H_out, W_out). Returns (N, C_out, H_out, W_out)."""
    N, C_in, H_in, W_in = x.shape
    _, C_out, K, K2 = w.shape
    assert K == K2
    s = int(stride)
    if K % s != 0:
        # TODO(synk): K % stride != 0 needs per-phase sub-kernels of unequal
        # size; fall back to the dilated im2col formulation for that case.
        raise NotImplementedError("generator_block requires kernel_size % stride == 0")
    kp = K // s
    H_out = (H_in - 1) * s + K
    W_out = (W_in - 1) * s + K

    # ---- host-side layout glue (one fused XLA copy) --------------------------
    # TODO(synk): build the phase patches inside the kernel from a single padded
    # (C_in, b_tile, Hp, Wp) DMA tile to cut the kp^2-duplicated cols HBM pass;
    # skipped here because the tiny (<16-lane) spatial rows relayout poorly in
    # VMEM at these shapes.
    cols, Hq, Wq = _phase_patches(x, kp)                 # (N, KKC, HWq)
    assert Hq * s == H_out and Wq * s == W_out
    HWq = Hq * Wq
    KKC = C_in * kp * kp
    Mrows = s * s * C_out
    cols = jnp.transpose(cols, (1, 0, 2)).reshape(KKC, N * HWq).astype(matmul_dtype)

    # Phase-stacked flipped weight: row = (ph*s+pw)*C_out + co,
    # col = ci*kp*kp + jh'*kp + jw'   (jh' = kp-1-jh flip matches the patches).
    w_r = w.reshape(C_in, C_out, kp, s, kp, s)[:, :, ::-1, :, ::-1, :]
    w_m = jnp.transpose(w_r, (3, 5, 1, 0, 2, 4)).reshape(Mrows, KKC).astype(matmul_dtype)
    bias_m = jnp.tile(b, s * s).reshape(Mrows, 1).astype(jnp.float32)

    # gamma/beta rearranged to the same phase-major layout.
    def to_phase(t):
        t = t.reshape(C_out, Hq, s, Wq, s)
        return jnp.transpose(t, (2, 4, 0, 1, 3)).reshape(Mrows, HWq)
    g_ph = to_phase(gamma).astype(matmul_dtype)
    beta_ph = to_phase(beta).astype(matmul_dtype)

    # ---- generation-aware tile sizing ----------------------------------------
    vmem_cap = _vmem_capacity_bytes()
    in_b = jnp.dtype(matmul_dtype).itemsize
    out_b = jnp.dtype(x.dtype).itemsize
    seg_cols_bound = max(8, ((min(N, 512) + 7) // 8) * 8)
    bytes_per_lane = (2 * KKC * in_b            # cols tile, double-buffered
                      + 2 * Mrows * out_b       # out tile, double-buffered
                      + Mrows * 4               # live f32 accumulator (worst case)
                      + 2 * 2 * Mrows * in_b    # gamma/beta residents
                      + 2 * 2 * seg_cols_bound * 4)   # seg / segT residents
    fixed_bytes = 2 * Mrows * KKC * in_b + 2 * Mrows * 4 + (2 << 20)
    budget = int(vmem_cap * 0.45)
    max_lanes = max(128, (budget - fixed_bytes) // bytes_per_lane)
    lane_target = min(max_lanes, 1024)   # keep the live f32 block regfile/VMEM friendly

    divisors = [d for d in range(1, N + 1) if N % d == 0]
    valid = [d for d in divisors if (d * HWq) % 128 == 0 and d * HWq <= max_lanes]
    if valid:
        fit = [d for d in valid if d * HWq <= lane_target] or [min(valid)]
        multi = [d for d in fit if N // d >= 2]    # prefer >= 2 parallel steps (v7x: 2 TCs)
        b_tile = max(multi) if multi else max(fit)
    else:
        # TODO(synk): no divisor of N makes the lane tile 128-dense; fall back to
        # one whole-batch tile (masked stores) rather than padding lane columns.
        b_tile = N
    lane_tile = b_tile * HWq
    grid = (N // b_tile,)

    # 0/1 segment matrices for per-sample LayerNorm moments (f32-exact).
    SEG = max(8, ((b_tile + 7) // 8) * 8)
    lane_sample = jnp.arange(lane_tile, dtype=jnp.int32) // HWq
    seg = (lane_sample[:, None] == jnp.arange(SEG, dtype=jnp.int32)[None, :]
           ).astype(jnp.float32)                       # (lane_tile, SEG)
    segT = seg.T                                       # (SEG, lane_tile)

    # gamma/beta tiled once per sample of the block (fetched once, resident).
    g_t = jnp.tile(g_ph, (1, b_tile))
    beta_t = jnp.tile(beta_ph, (1, b_tile))

    kernel = functools.partial(
        _generator_block_kernel,
        inv_n=1.0 / float(C_out * H_out * W_out), eps=float(eps),
        act=activation_fn)

    out2d = pl.pallas_call(
        kernel,
        out_shape=jax.ShapeDtypeStruct((Mrows, N * HWq), x.dtype),
        grid=grid,
        in_specs=[
            pl.BlockSpec((KKC, lane_tile), lambda i: (0, i)),
            pl.BlockSpec((Mrows, KKC), lambda i: (0, 0)),
            pl.BlockSpec((Mrows, 1), lambda i: (0, 0)),
            pl.BlockSpec((Mrows, lane_tile), lambda i: (0, 0)),
            pl.BlockSpec((Mrows, lane_tile), lambda i: (0, 0)),
            pl.BlockSpec((lane_tile, SEG), lambda i: (0, 0)),
            pl.BlockSpec((SEG, lane_tile), lambda i: (0, 0)),
        ],
        out_specs=pl.BlockSpec((Mrows, lane_tile), lambda i: (0, i)),
        compiler_params=pltpu.CompilerParams(
            dimension_semantics=("parallel",),
            vmem_limit_bytes=int(min(vmem_cap * 3 // 4, 120 * 1024 * 1024))),
    )(cols, w_m, bias_m, g_t, beta_t, seg, segT)

    # Pixel-unshuffle the phase layout back to NCHW.
    o = out2d.reshape(s, s, C_out, N, Hq, Wq)
    o = jnp.transpose(o, (3, 2, 4, 0, 5, 1))
    return o.reshape(N, C_out, H_out, W_out)


if __name__ == "__main__":
    key = jax.random.PRNGKey(0)
    # ConvTranspose2d(in=4, out=8, kernel=4, stride=2) on a 7x7 input -> 16x16,
    # so LayerNorm(normalized_shape=[8, 16, 16]).
    N, C_in, C_out = 2, 4, 8
    K, stride = 4, 2
    H_in = W_in = 7
    height = width = (H_in - 1) * stride + K          # 16

    k1, k2, k3, k4, k5 = jax.random.split(key, 5)
    x = jax.random.normal(k1, (N, C_in, H_in, W_in), jnp.float32)
    w = jax.random.normal(k2, (C_in, C_out, K, K), jnp.float32) * 0.1
    b = jax.random.normal(k3, (C_out,), jnp.float32) * 0.1
    gamma = 1.0 + 0.1 * jax.random.normal(k4, (C_out, height, width), jnp.float32)
    beta = 0.1 * jax.random.normal(k5, (C_out, height, width), jnp.float32)

    # Pure-JAX f32 reference of the module forward pass.
    w_conv = jnp.transpose(w[:, :, ::-1, ::-1], (1, 0, 2, 3))  # (C_out,C_in,K,K)
    y_ref = jax.lax.conv_general_dilated(
        x, w_conv, window_strides=(1, 1),
        padding=[(K - 1, K - 1), (K - 1, K - 1)],
        lhs_dilation=(stride, stride),
        dimension_numbers=("NCHW", "OIHW", "NCHW"),
        precision=jax.lax.Precision.HIGHEST) + b[None, :, None, None]
    mean = y_ref.mean(axis=(1, 2, 3), keepdims=True)
    var = ((y_ref - mean) ** 2).mean(axis=(1, 2, 3), keepdims=True)
    y_ref = (y_ref - mean) / jnp.sqrt(var + 1e-5) * gamma[None] + beta[None]
    y_ref = jnp.maximum(y_ref, 0.0)

    # f32-matmul run: tight check (verifies the phase/layout/LN bookkeeping).
    out_f32 = generator_block(x, w, b, gamma, beta, stride=stride,
                              activation_fn="relu", matmul_dtype=jnp.float32)
    out_f32 = jax.block_until_ready(out_f32)
    assert out_f32.shape == (N, C_out, height, width)
    assert jnp.allclose(out_f32, y_ref, rtol=1e-3, atol=1e-3), \
        float(jnp.max(jnp.abs(out_f32 - y_ref)))

    # bf16-matmul run (fast path): looser tolerance, math after the dot is f32.
    out_bf16 = generator_block(x, w, b, gamma, beta, stride=stride,
                               activation_fn="relu")
    out_bf16 = jax.block_until_ready(out_bf16)
    assert jnp.allclose(out_bf16, y_ref, rtol=3e-2, atol=3e-2), \
        float(jnp.max(jnp.abs(out_bf16 - y_ref)))

    print("KERNEL_OK")
</pallas_src>

<mosaic_0001>
module attributes {stable_mosaic.version = 11 : i64} {
  func.func @_generator_block_kernel(%arg0: i32, %arg1: memref<16x128xf32, #tpu.memory_space<vmem>>, %arg2: memref<32x16xf32, #tpu.memory_space<vmem>>, %arg3: memref<32x1xf32, #tpu.memory_space<vmem>>, %arg4: memref<32x128xf32, #tpu.memory_space<vmem>>, %arg5: memref<32x128xf32, #tpu.memory_space<vmem>>, %arg6: memref<128x8xf32, #tpu.memory_space<vmem>>, %arg7: memref<8x128xf32, #tpu.memory_space<vmem>>, %arg8: memref<32x128xf32, #tpu.memory_space<vmem>>) attributes {dimension_semantics = [#tpu.dimension_semantics<parallel>], iteration_bounds = array<i64: 1>, scalar_prefetch = 0 : i64, scratch_operands = 0 : i64, tpu.core_type = #tpu.core_type<tc>, window_params = [{transform_indices = @transform_0, window_bounds = array<i64: 16, 128>}, {pipeline_mode = #tpu.pipeline_mode<synchronous>, transform_indices = @transform_1, window_bounds = array<i64: 32, 16>}, {pipeline_mode = #tpu.pipeline_mode<synchronous>, transform_indices = @transform_2, window_bounds = array<i64: 32, 1>}, {pipeline_mode = #tpu.pipeline_mode<synchronous>, transform_indices = @transform_3, window_bounds = array<i64: 32, 128>}, {pipeline_mode = #tpu.pipeline_mode<synchronous>, transform_indices = @transform_4, window_bounds = array<i64: 32, 128>}, {pipeline_mode = #tpu.pipeline_mode<synchronous>, transform_indices = @transform_5, window_bounds = array<i64: 128, 8>}, {pipeline_mode = #tpu.pipeline_mode<synchronous>, transform_indices = @transform_6, window_bounds = array<i64: 8, 128>}, {transform_indices = @transform_7, window_bounds = array<i64: 32, 128>}]} {
    %c0 = arith.constant 0 : index
    %c0_0 = arith.constant 0 : index
    %0 = vector.load %arg2[%c0, %c0_0] : memref<32x16xf32, #tpu.memory_space<vmem>>, vector<32x16xf32>
    %c0_1 = arith.constant 0 : index
    %c0_2 = arith.constant 0 : index
    %1 = vector.load %arg1[%c0_1, %c0_2] : memref<16x128xf32, #tpu.memory_space<vmem>>, vector<16x128xf32>
    %cst = arith.constant dense<0.000000e+00> : vector<32x128xf32>
    %2 = tpu.matmul %0, %1, %cst {dimension_numbers = #tpu.dot_dimension_numbers<[1], [0], [0], [1], [0, 0, 1, 1], [], []>} : vector<32x16xf32>, vector<16x128xf32>, vector<32x128xf32> -> vector<32x128xf32>
    %c0_3 = arith.constant 0 : index
    %c0_4 = arith.constant 0 : index
    %3 = vector.load %arg3[%c0_3, %c0_4] : memref<32x1xf32, #tpu.memory_space<vmem>>, vector<32x1xf32>
    %4 = vector.broadcast %3 : vector<32x1xf32> to vector<32x128xf32>
    %5 = arith.addf %2, %4 : vector<32x128xf32>
    %cst_5 = arith.constant dense<0.000000e+00> : vector<128xf32>
    %6 = vector.multi_reduction <add>, %5, %cst_5 [0] : vector<32x128xf32> to vector<128xf32>
    %7 = vector.shape_cast %6 : vector<128xf32> to vector<1x128xf32>
    %8 = arith.mulf %5, %5 : vector<32x128xf32>
    %cst_6 = arith.constant dense<0.000000e+00> : vector<128xf32>
    %9 = vector.multi_reduction <add>, %8, %cst_6 [0] : vector<32x128xf32> to vector<128xf32>
    %10 = vector.shape_cast %9 : vector<128xf32> to vector<1x128xf32>
    %c0_7 = arith.constant 0 : index
    %c0_8 = arith.constant 0 : index
    %11 = vector.load %arg6[%c0_7, %c0_8] : memref<128x8xf32, #tpu.memory_space<vmem>>, vector<128x8xf32>
    %cst_9 = arith.constant dense<0.000000e+00> : vector<1x8xf32>
    %12 = tpu.matmul %7, %11, %cst_9 {dimension_numbers = #tpu.dot_dimension_numbers<[1], [0], [0], [1], [0, 0, 1, 1], [], []>} : vector<1x128xf32>, vector<128x8xf32>, vector<1x8xf32> -> vector<1x8xf32>
    %c0_10 = arith.constant 0 : index
    %c0_11 = arith.constant 0 : index
    %13 = vector.load %arg6[%c0_10, %c0_11] : memref<128x8xf32, #tpu.memory_space<vmem>>, vector<128x8xf32>
    %cst_12 = arith.constant dense<0.000000e+00> : vector<1x8xf32>
    %14 = tpu.matmul %10, %13, %cst_12 {dimension_numbers = #tpu.dot_dimension_numbers<[1], [0], [0], [1], [0, 0, 1, 1], [], []>} : vector<1x128xf32>, vector<128x8xf32>, vector<1x8xf32> -> vector<1x8xf32>
    %c0_13 = arith.constant 0 : index
    %c0_14 = arith.constant 0 : index
    %15 = vector.load %arg7[%c0_13, %c0_14] : memref<8x128xf32, #tpu.memory_space<vmem>>, vector<8x128xf32>
    %cst_15 = arith.constant dense<0.000000e+00> : vector<1x128xf32>
    %16 = tpu.matmul %12, %15, %cst_15 {dimension_numbers = #tpu.dot_dimension_numbers<[1], [0], [0], [1], [0, 0, 1, 1], [], []>} : vector<1x8xf32>, vector<8x128xf32>, vector<1x128xf32> -> vector<1x128xf32>
    %cst_16 = arith.constant 4.8828125E-4 : f32
    %17 = vector.broadcast %cst_16 : f32 to vector<1x128xf32>
    %18 = arith.mulf %16, %17 : vector<1x128xf32>
    %c0_17 = arith.constant 0 : index
    %c0_18 = arith.constant 0 : index
    %19 = vector.load %arg7[%c0_17, %c0_18] : memref<8x128xf32, #tpu.memory_space<vmem>>, vector<8x128xf32>
    %cst_19 = arith.constant dense<0.000000e+00> : vector<1x128xf32>
    %20 = tpu.matmul %14, %19, %cst_19 {dimension_numbers = #tpu.dot_dimension_numbers<[1], [0], [0], [1], [0, 0, 1, 1], [], []>} : vector<1x8xf32>, vector<8x128xf32>, vector<1x128xf32> -> vector<1x128xf32>
    %cst_20 = arith.constant 4.8828125E-4 : f32
    %21 = vector.broadcast %cst_20 : f32 to vector<1x128xf32>
    %22 = arith.mulf %20, %21 : vector<1x128xf32>
    %23 = arith.mulf %18, %18 : vector<1x128xf32>
    %24 = arith.subf %22, %23 : vector<1x128xf32>
    %cst_21 = arith.constant 0.000000e+00 : f32
    %25 = vector.broadcast %cst_21 : f32 to vector<1x128xf32>
    %26 = arith.maximumf %24, %25 : vector<1x128xf32>
    %cst_22 = arith.constant 9.99999974E-6 : f32
    %27 = vector.broadcast %cst_22 : f32 to vector<1x128xf32>
    %28 = arith.addf %26, %27 : vector<1x128xf32>
    %29 = math.rsqrt %28 : vector<1x128xf32>
    %c0_23 = arith.constant 0 : index
    %c0_24 = arith.constant 0 : index
    %30 = vector.load %arg4[%c0_23, %c0_24] : memref<32x128xf32, #tpu.memory_space<vmem>>, vector<32x128xf32>
    %c0_25 = arith.constant 0 : index
    %c0_26 = arith.constant 0 : index
    %31 = vector.load %arg5[%c0_25, %c0_26] : memref<32x128xf32, #tpu.memory_space<vmem>>, vector<32x128xf32>
    %32 = vector.broadcast %18 : vector<1x128xf32> to vector<32x128xf32>
    %33 = arith.subf %5, %32 : vector<32x128xf32>
    %34 = vector.broadcast %29 : vector<1x128xf32> to vector<32x128xf32>
    %35 = arith.mulf %33, %34 : vector<32x128xf32>
    %36 = arith.mulf %35, %30 : vector<32x128xf32>
    %37 = arith.addf %36, %31 : vector<32x128xf32>
    %cst_27 = arith.constant 0.000000e+00 : f32
    %38 = vector.broadcast %cst_27 : f32 to vector<32x128xf32>
    %39 = arith.maximumf %37, %38 : vector<32x128xf32>
    %c0_28 = arith.constant 0 : index
    %c0_29 = arith.constant 0 : index
    %40 = vector.load %arg8[%c0_28, %c0_29] : memref<32x128xf32, #tpu.memory_space<vmem>>, vector<32x128xf32>
    tpu.vector_store %arg8[%c0_28, %c0_29], %39 {strides = array<i32>} : memref<32x128xf32, #tpu.memory_space<vmem>>, vector<32x128xf32>,
    return
  }
  func.func @transform_0(%arg0: i32) -> (i32, i32) {
    %c0_i32 = arith.constant 0 : i32
    %c0_i32_0 = arith.constant 0 : i32
    return %c0_i32, %arg0 : i32, i32
  }
  func.func @transform_1(%arg0: i32) -> (i32, i32) {
    %c0_i32 = arith.constant 0 : i32
    %c0_i32_0 = arith.constant 0 : i32
    %c0_i32_1 = arith.constant 0 : i32
    return %c0_i32, %c0_i32_0 : i32, i32
  }
  func.func @transform_2(%arg0: i32) -> (i32, i32) {
    %c0_i32 = arith.constant 0 : i32
    %c0_i32_0 = arith.constant 0 : i32
    %c0_i32_1 = arith.constant 0 : i32
    return %c0_i32, %c0_i32_0 : i32, i32
  }
  func.func @transform_3(%arg0: i32) -> (i32, i32) {
    %c0_i32 = arith.constant 0 : i32
    %c0_i32_0 = arith.constant 0 : i32
    %c0_i32_1 = arith.constant 0 : i32
    return %c0_i32, %c0_i32_0 : i32, i32
  }
  func.func @transform_4(%arg0: i32) -> (i32, i32) {
    %c0_i32 = arith.constant 0 : i32
    %c0_i32_0 = arith.constant 0 : i32
    %c0_i32_1 = arith.constant 0 : i32
    return %c0_i32, %c0_i32_0 : i32, i32
  }
  func.func @transform_5(%arg0: i32) -> (i32, i32) {
    %c0_i32 = arith.constant 0 : i32
    %c0_i32_0 = arith.constant 0 : i32
    %c0_i32_1 = arith.constant 0 : i32
    return %c0_i32, %c0_i32_0 : i32, i32
  }
  func.func @transform_6(%arg0: i32) -> (i32, i32) {
    %c0_i32 = arith.constant 0 : i32
    %c0_i32_0 = arith.constant 0 : i32
    %c0_i32_1 = arith.constant 0 : i32
    return %c0_i32, %c0_i32_0 : i32, i32
  }
  func.func @transform_7(%arg0: i32) -> (i32, i32) {
    %c0_i32 = arith.constant 0 : i32
    %c0_i32_0 = arith.constant 0 : i32
    return %c0_i32, %arg0 : i32, i32
  }
}

</mosaic_0001>

<bundles_post_ra>
// kernel: tpu_custom_call.1
= control target key start
LH: loop header
LB: loop body
LE: loop exit
PB: predicated region body
PF: predicated region fallthrough
CT: control target
= control target key end

     0   :  { %vm57_vm0 = vcmask 130048   ;;  %v771_v4 = vmov 0   ;;  %v772_v8 = vmov 0.0|0.0   ;;  %s983_s0 = inlined_call_operand.vmem [shape: f32[16,128], index: 0, kind: input, shape index: {}]   ;;  %s984_s1 = inlined_call_operand.vmem [shape: f32[32,16], index: 1, kind: input, shape index: {}]   ;;  %s985_s2 = inlined_call_operand.vmem [shape: f32[32,1], index: 2, kind: input, shape index: {}]   ;;  %s986_s3 = inlined_call_operand.vmem [shape: f32[32,128], index: 3, kind: input, shape index: {}]   ;;  %s987_s4 = inlined_call_operand.vmem [shape: f32[32,128], index: 4, kind: input, shape index: {}]   ;;  %s988_s5 = inlined_call_operand.vmem [shape: f32[128,8], index: 5, kind: input, shape index: {}]   ;;  %s989_s6 = inlined_call_operand.vmem [shape: f32[8,128], index: 6, kind: input, shape index: {}]   ;;  %s990_s7 = inlined_call_operand.hbm [shape: f32[32,128], index: 7, kind: output, shape index: {}]  }
   0x1   :  { %v31_v0 = vld [vmem:[%s983_s0] sm:$0xff]  ;;  %v32_v1 = vld [vmem:[%s983_s0 + $0x8] sm:$0xff]  ;;  %743 = vset.pattern.permute.xlu0 %v771_v4  ;;  %744 = vset.pattern.permute.xlu1 %v771_v4  ;;  %v35_v7 = vld [vmem:[%s985_s2 + $0x10] sm:$0xff] }
   0x2   :  { %v27_v2 = vld [vmem:[%s984_s1] sm:$0xff]  ;;  %v684_v3 = vpack.c.bf16 %v32_v1, %v31_v0  ;;  %v28_v5 = vld [vmem:[%s984_s1 + $0x8] sm:$0xff]  ;;  %688 = vmatprep.subr.bf16.mxu1 %v772_v8  ;;  %49 = vperm.xlu1 %744, %v35_v7   ;;  %v179_v13 = vld [vmem:[%s988_s5 + $0x10] sm:$0xff] }
   0x3   :  { %598 = vmatprep.mubr.msk.f32.mxu0 %vm57_vm0, %v27_v2  ;;  %v33_v6 = vld [vmem:[%s985_s2] sm:$0xff]  ;;  %v34_v9 = vld [vmem:[%s985_s2 + $0x8] sm:$0xff]  ;;  %v180_v14 = vld [vmem:[%s988_s5 + $0x18] sm:$0xff] }
   0x4   :  { %685 = vmatprep.subr.bf16.mxu0 %v684_v3  ;;  %39 = vperm.xlu0 %743, %v33_v6   ;;  %v177_v10 = vld [vmem:[%s988_s5] sm:$0xff]  ;;  %v178_v11 = vld [vmem:[%s988_s5 + $0x8] sm:$0xff] }
   0x5   :  { %687 = vmatpush3.bf16.msra.mxu0 %v684_v3  ;;  %v689_v12 = vpack.c.bf16 %v178_v11, %v177_v10 }
   0x6   :  { %12 = vsyncpa [#allocation3], 0  ;;  %v29_v15 = vld [vmem:[%s984_s1 + $0x10] sm:$0xff]  ;;  %v36_v16 = vld [vmem:[%s985_s2 + $0x18] sm:$0xff]  ;;  %712 = vmatprep.subr.bf16.mxu0 %v772_v8  ;;  %v692_v17 = vpack.c.bf16 %v180_v14, %v179_v13  ;;  %vm773_vm1 = vmmov 0   ;;  %v774_v37 = vmov 0.0  }
   0x7   :  { %690 = vmatpush3.bf16.msra.mxu1 %v689_v12  ;;  %v30_v18 = vld [vmem:[%s984_s1 + $0x18] sm:$0xff]  ;;  %54 = vperm.xlu1 %744, %v36_v16   ;;  %v181_v19 = vld [vmem:[%s988_s5 + $0x20] sm:$0xff]  ;;  %v182_v20 = vld [vmem:[%s988_s5 + $0x28] sm:$0xff]  ;;  %vm334_vm2 = vcmask 64512  }
   0x8   :  { %599 = vmatmul.mubr.msk.f32.vlgmr.msra.gmra.mrb[0].mxu0 %vm57_vm0, %v28_v5  ;;  %44 = vperm.xlu0 %743, %v34_v9   ;;  %v695_v21 = vpack.c.bf16 %v182_v20, %v181_v19  ;;  %v183_v22 = vld [vmem:[%s988_s5 + $0x30] sm:$0xff]  ;;  %v184_v23 = vld [vmem:[%s988_s5 + $0x38] sm:$0xff]  ;;  %v185_v25 = vld [vmem:[%s988_s5 + $0x40] sm:$0xff]  ;;  %v496_v20 = vlaneseq }
   0x9   :  { %601 = vmatprep.mubr.msk.f32.mxu0 %vm57_vm0, %v29_v15  ;;  %714 = vmatpush3.bf16.msra.mxu0 %v689_v12  ;;  %v698_v24 = vpack.c.bf16 %v184_v23, %v183_v22  ;;  %v186_v26 = vld [vmem:[%s988_s5 + $0x48] sm:$0xff]  ;;  %v187_v28 = vld [vmem:[%s988_s5 + $0x50] sm:$0xff]  ;;  %v188_v29 = vld [vmem:[%s988_s5 + $0x58] sm:$0xff] }
   0xa   :  { %691 = vmatprep.subr.bf16.mxu1 %v772_v8  ;;  %715 = vmatprep.subr.bf16.mxu0 %v772_v8  ;;  %v701_v27 = vpack.c.bf16 %v186_v26, %v185_v25  ;;  %v704_v30 = vpack.c.bf16 %v188_v29, %v187_v28  ;;  %v189_v31 = vld [vmem:[%s988_s5 + $0x60] sm:$0xff]  ;;  %v190_v32 = vld [vmem:[%s988_s5 + $0x68] sm:$0xff]  ;;  %v191_v34 = vld [vmem:[%s988_s5 + $0x70] sm:$0xff]  ;;  %v497_v23 = vshrl.u32 %v496_v20, 7 }
   0xb   :  { %693 = vmatpush3.bf16.msra.mxu1 %v692_v17  ;;  %v707_v33 = vpack.c.bf16 %v190_v32, %v189_v31  ;;  %v192_v35 = vld [vmem:[%s988_s5 + $0x78] sm:$0xff]  ;;  %636 = vmatprep.mubr.msk.f32.mxu1 %vm773_vm1, %v774_v37  ;;  %v333_v7 = vld [vmem:[%s989_s6] sm:$0xff] }
   0xc   :  { %602 = vmatmul.mubr.msk.f32.gmra.mrb[2].mxu0 %vm57_vm0, %v30_v18  ;;  %694 = vmatprep.subr.bf16.mxu1 %v772_v8  ;;  %v710_v36 = vpack.c.bf16 %v192_v35, %v191_v34  ;;  %v498_v25 = vsub.s32 0, %v497_v23  ;;  %v489_v34 = vld [vmem:[%s986_s3 + $0x8] sm:$0xff]  ;;  %v490_v35 = vld [vmem:[%s986_s3 + $0x10] sm:$0xff] }
   0xd   :  { %717 = vmatpush3.bf16.msra.mxu0 %v692_v17  ;;  %671 = vmatprep.mubr.msk.f32.mxu0 %vm773_vm1, %v774_v37 }
   0xe   :  { %718 = vmatprep.subr.bf16.mxu0 %v772_v8 }
   0xf   :  { %696 = vmatpush3.bf16.msra.mxu1 %v695_v21 }
  0x10   :  { %697 = vmatprep.subr.bf16.mxu1 %v772_v8 }
  0x11   :  { %720 = vmatpush3.bf16.msra.mxu0 %v695_v21 }
  0x12   :  { %721 = vmatprep.subr.bf16.mxu0 %v772_v8 }
  0x13   :  { %699 = vmatpush3.bf16.msra.mxu1 %v698_v24 }
  0x14   :  { %700 = vmatprep.subr.bf16.mxu1 %v772_v8 }
  0x15   :  { %723 = vmatpush3.bf16.msra.mxu0 %v698_v24 }
  0x16   :  { %724 = vmatprep.subr.bf16.mxu0 %v772_v8 }
  0x17   :  { %702 = vmatpush3.bf16.msra.mxu1 %v701_v27 }
  0x18   :  { %703 = vmatprep.subr.bf16.mxu1 %v772_v8 }
  0x19   :  { %726 = vmatpush3.bf16.msra.mxu0 %v701_v27 }
  0x1a   :  { %727 = vmatprep.subr.bf16.mxu0 %v772_v8 }
  0x1b   :  { %705 = vmatpush3.bf16.msra.mxu1 %v704_v30 }
  0x1c   :  { %706 = vmatprep.subr.bf16.mxu1 %v772_v8 }
  0x1d   :  { %729 = vmatpush3.bf16.msra.mxu0 %v704_v30 }
  0x1e   :  { %730 = vmatprep.subr.bf16.mxu0 %v772_v8 }
  0x1f   :  { %708 = vmatpush3.bf16.msra.mxu1 %v707_v33 }
  0x20   :  { %709 = vmatprep.subr.bf16.mxu1 %v772_v8 }
  0x21   :  { %732 = vmatpush3.bf16.msra.mxu0 %v707_v33  ;;  %v488_v33 = vld [vmem:[%s986_s3] sm:$0xff] }
  0x22   :  { %733 = vmatprep.subr.bf16.mxu0 %v772_v8 }
  0x23   :  { %711 = vmatpush3.bf16.msra.mxu1 %v710_v36 }
  0x24   :  { %674 = vmatprep.subr.mxu1 %v774_v37 }
  0x25   :  { %735 = vmatpush3.bf16.msra.mxu0 %v710_v36  ;;  %v491_v36 = vld [vmem:[%s986_s3 + $0x18] sm:$0xff]  ;;  %s775_s3 = smov [#allocation2]  }
  0x26   :  { %679 = vmatprep.subr.mxu0 %v774_v37  ;;  %s533_s16 = sshll.u32 %s775_s3, 4  ;;  %s534_s16 = int_to_ptr.vmem [resolvable:$true] %s533_s16 }
  0x27   :  { %p752_p1 = scmp.lt.s32.totalorder %s534_s16, %s534_s16 }
  0x81   :  { %v50_v39 = vpop.permute.xlu1 %49 }
  0x83   :  { %v40_v38 = vpop.permute.xlu0 %39 }
  0x86   :  { %v55_v45 = vpop.permute.xlu1 %54 }
  0x87   :  { %v45_v40 = vpop.permute.xlu0 %44 }
  0xdb   :  { %v600_v41 = vpop.f32.mrb[0].mxu0 }
  0xdc   :  { %v918_v42 = vadd.f32 %v600_v41, %v45_v40  ;;  %v136_v43 = vpop.f32.mrb[1].mxu0 }
  0xdd   :  { %v920_v44 = vadd.f32 %v136_v43, %v40_v38  ;;  %v494_v43 = vld [vmem:[%s987_s4 + $0x10] sm:$0xff] }
  0xde   :  { %v165_v46 = vmul.f32 %v918_v42, %v918_v42 }
  0xdf   :  { %v164_v47 = vmul.f32 %v920_v44, %v920_v44  ;;  %v603_v48 = vpop.f32.mrb[2].mxu0  ;;  %v155_v50 = vadd.f32 %v918_v42, %v920_v44 }
  0xe0   :  { %v146_v49 = vpop.f32.mrb[3].mxu0  ;;  %v928_v51 = vadd.f32 %v603_v48, %v55_v45 }
  0xe1   :  { %v930_v52 = vadd.f32 %v146_v49, %v50_v39  ;;  %v168_v53 = vadd.f32 %v165_v46, %v164_v47 }
  0xe2   :  { %v167_v56 = vmul.f32 %v928_v51, %v928_v51 }
  0xe3   :  { %v156_v54 = vadd.f32 %v155_v50, %v930_v52  ;;  %v166_v55 = vmul.f32 %v930_v52, %v930_v52 }
  0xe5   :  { %v157_v57 = vadd.f32 %v156_v54, %v928_v51  ;;  %v169_v58 = vadd.f32 %v168_v53, %v166_v55 }
  0xe7   :  { %v158_v59 = vrot.slane %v157_v57, 4  ;;  %v170_v60 = vadd.f32 %v169_v58, %v167_v56 }
  0xe9   :  { %v171_v61 = vrot.slane %v170_v60, 4  ;;  %v159_v62 = vadd.f32 %v158_v59, %v157_v57 }
  0xeb   :  { %v172_v63 = vadd.f32 %v171_v61, %v170_v60  ;;  %v160_v0 = vrot.slane %v159_v62, 2 }
  0xed   :  { %v173_v1 = vrot.slane %v172_v63, 2  ;;  %v161_v2 = vadd.f32 %v160_v0, %v159_v62 }
  0xef   :  { %v174_v3 = vadd.f32 %v173_v1, %v172_v63  ;;  %v162_v4 = vrot.slane %v161_v2, 1 }
  0xf1   :  { %v163_v5 = vadd.f32 %v162_v4, %v161_v2  ;;  %v175_v6 = vrot.slane %v174_v3, 1 }
  0xf3   :  { %637 = vmatmul.mubr.f32.vlgmr.msra.gmra.mrb[0].mxu1 %v163_v5  ;;  %v176_v8 = vadd.f32 %v175_v6, %v174_v3 }
  0xf4   :  { %675 = vmatpush3.msra.mxu1 %v333_v7  ;;  %676 = vmatprep.mubr.msk.f32.mxu1 %vm773_vm1, %v774_v37 }
  0xf5   :  { %672 = vmatmul.mubr.f32.vlgmr.msra.gmra.mrb[4].mxu0 %v176_v8 }
  0xf6   :  { %680 = vmatpush3.msra.mxu0 %v333_v7  ;;  %681 = vmatprep.mubr.msk.f32.mxu0 %vm773_vm1, %v774_v37  ;;  %v492_v37 = vld [vmem:[%s987_s4] sm:$0xff] }
 0x1c6   :  { %v259_v9 = vpop.f32.mrb[0].mxu1 }
 0x1c7   :  { %v638_v10 = vpop.f32.mrb[1].mxu1  ;;  %677 = vmatmul.mubr.msk.f32.vlgmr.msra.gmra.mrb[2].mxu1 %vm334_vm2, %v259_v9 }
 0x1c8   :  { %v329_v11 = vpop.f32.mrb[4].mxu0 }
 0x1c9   :  { %v673_v12 = vpop.f32.mrb[5].mxu0  ;;  %682 = vmatmul.mubr.msk.f32.vlgmr.msra.gmra.mrb[6].mxu0 %vm334_vm2, %v329_v11 }
 0x29a   :  { %v404_v13 = vpop.f32.mrb[2].mxu1 }
 0x29b   :  { %v408_v14 = vmul.f32 0.00048828125, %v404_v13  ;;  %v678_v15 = vpop.f32.mrb[3].mxu1 }
 0x29c   :  { %v478_v16 = vpop.f32.mrb[6].mxu0 }
 0x29d   :  { %v483_v17 = vmul.f32 %v408_v14, %v408_v14  ;;  %v482_v18 = vmul.f32 0.00048828125, %v478_v16  ;;  %v683_v19 = vpop.f32.mrb[7].mxu0  ;;  %v499_v26 = vrot.slane %v408_v14, %v498_v25 }
 0x29f   :  { %v484_v21 = vsub.f32 %v482_v18, %v483_v17  ;;  %v500_v28 = vsub.f32 %v920_v44, %v499_v26  ;;  %v501_v29 = vsub.f32 %v918_v42, %v499_v26  ;;  %v502_v30 = vsub.f32 %v930_v52, %v499_v26  ;;  %v493_v42 = vld [vmem:[%s987_s4 + $0x8] sm:$0xff]  ;;  %v495_v44 = vld [vmem:[%s987_s4 + $0x18] sm:$0xff]  ;;  %s747_s4 = scalar_lea.vmem %s534_s16, 512 }
 0x2a0   :  { %v503_v31 = vsub.f32 %v928_v51, %v499_v26  ;;  %p748_p0 = scmp.ne.s32.totalorder %s534_s16, %s747_s4  ;;  %p753_p2 = scmp.lt.s32.totalorder %s747_s4, %s747_s4 }
 0x2a1   :  { %v485_v22 = vmax.f32 %v484_v21, 0.0 }
 0x2a2   :  { %p754_p3 = por %p753_p2, %p752_p1 }
 0x2a3   :  { %v486_v24 = vadd.f32 1e-05, %v485_v22 }
 0x2a4   :  { %p755_p4 = pnand %p754_p3, %p748_p0 }
 0x2a5   :  { %745 = vrsqrt.f32 %v486_v24 }
 0x2af   :  { %v746_v27 = vpop.eup %745 }
 0x2b0   :  { %v507_v32 = vrot.slane %v746_v27, %v498_v25 }
 0x2b2   :  { %v508_v38 = vmul.f32 %v507_v32, %v500_v28  ;;  %v509_v39 = vmul.f32 %v507_v32, %v501_v29  ;;  %v510_v40 = vmul.f32 %v507_v32, %v502_v30  ;;  %v511_v41 = vmul.f32 %v507_v32, %v503_v31 }
 0x2b4   :  { %v512_v45 = vmul.f32 %v508_v38, %v488_v33  ;;  %v513_v46 = vmul.f32 %v509_v39, %v489_v34  ;;  %v514_v47 = vmul.f32 %v510_v40, %v490_v35  ;;  %v515_v48 = vmul.f32 %v511_v41, %v491_v36 }
 0x2b6   :  { %v516_v49 = vadd.f32 %v512_v45, %v492_v37  ;;  %v517_v50 = vadd.f32 %v513_v46, %v493_v42  ;;  %v518_v51 = vadd.f32 %v514_v47, %v494_v43  ;;  %v519_v52 = vadd.f32 %v515_v48, %v495_v44 }
 0x2b8   :  { %v520_v53 = vmax.f32 %v516_v49, 0.0  ;;  %v521_v54 = vmax.f32 %v517_v50, 0.0  ;;  %v522_v55 = vmax.f32 %v518_v51, 0.0  ;;  %v523_v56 = vmax.f32 %v519_v52, 0.0 }
 0x2ba   :  { %524 = vst [vmem:[#allocation2] sm:$0xff] %v520_v53  ;;  %525 = vst [vmem:[#allocation2 + $0x8] sm:$0xff] %v521_v54 }
 0x2bb   :  { %526 = vst [vmem:[#allocation2 + $0x10] sm:$0xff] %v522_v55  ;;  %527 = vst [vmem:[#allocation2 + $0x18] sm:$0xff] %v523_v56 }
 0x2bc   :  { %758 = shalt.err (!%p755_p4)
}
 0x2bd   :  { %s759_s19 = scalar_lea.hbm %s990_s7, 512 }
 0x2be   :  { %p760_p5 = scmp.ne.s32.totalorder %s990_s7, %s759_s19  ;;  %p763_p6 = scmp.lt.u32.totalorder %s759_s19, %s990_s7 }
 0x2c0   :  { %p765_p7 = pnand %p763_p6, %p760_p5 }
 0x2c2   :  { %768 = shalt.err (!%p765_p7)
}
 0x2c3   :  { %s776_s24 = smov 128   ;;  %s777_s25 = smov 8  }
 0x2c4   :  { %539 = dma.vmem_to_hbm [thread:$0]  %s534_s16, 512, %s990_s7, [#allocation3], %s776_s24, %s776_s24, %s777_s25  }
 0x2c5   :  { %769 = dma.done.wait [#allocation3], 512  }
 0x2c6   :  { %770 = vsyncadd [#allocation3], 4294966784 }
 0x2c7   :  { %543 = vsyncpa [#allocation3], 1 }

</bundles_post_ra>
